<compile_context>
chip_gen: v7x
topology: tpu7x:2x2x1
jax: 0.10.0
libtpu: 0.0.40
codegen_flags: <defaults>
</compile_context>

<pallas_src>
import functools

import jax
import jax.numpy as jnp
from jax.experimental import pallas as pl
from jax.experimental.pallas import tpu as pltpu


def _round_up(x, m):
    return ((x + m - 1) // m) * m


def _vmem_budget_bytes():
    """Physical VMEM capacity minus headroom (v5e/v6e: 128 MiB, v7x: 64 MiB)."""
    try:
        cap = int(pltpu.get_tpu_info().vmem_capacity_bytes)
    except Exception:
        cap = 64 << 20  # conservative fallback (v7x per-core VMEM)
    return max(cap - (12 << 20), 32 << 20)


def _step_vmem_bytes(tm, tn, tk, in_isz, out_isz):
    """Per-grid-step VMEM footprint: double-buffered blocks + scratch + temps."""
    x_blk = 2 * tm * tk * in_isz
    w_blk = 2 * tk * (2 * tn) * in_isz
    b_blk = 2 * (2 * tn) * 4
    o_blk = 2 * tm * tn * out_isz
    acc = tm * (2 * tn) * 4        # f32 accumulator scratch (single buffer)
    h_tmp = tm * (2 * tn) * 4      # f32 epilogue intermediate
    return x_blk + w_blk + b_blk + o_blk + acc + h_tmp + (1 << 20)


# ---------------------------------------------------------------------------
# Kernel
# ---------------------------------------------------------------------------
def _glu_kernel(x_ref, w_ref, b_ref, o_ref, acc_ref, *, tn, approx):
    # x_ref: (tm, tk)    w_ref: (tk, 2*tn)   b_ref: (1, 2*tn)
    # o_ref: (tm, tn)    acc_ref: (tm, 2*tn) f32 scratch
    k = pl.program_id(2)

    @pl.when(k == 0)
    def _():
        acc_ref[...] = jnp.zeros_like(acc_ref)

    # One fused MXU matmul per step: columns [0, tn) are the fc1 (gate)
    # projection for this hidden tile, columns [tn, 2*tn) are fc2 (value).
    acc_ref[...] += jnp.dot(x_ref[...], w_ref[...],
                            preferred_element_type=jnp.float32)

    @pl.when(k == pl.num_programs(2) - 1)
    def _():
        h = acc_ref[...] + b_ref[...]
        g = h[:, :tn]                      # lane-aligned split (tn % 128 == 0)
        v = h[:, tn:]
        gate = pl.reciprocal(1.0 + jnp.exp(-g), approx=approx)
        o_ref[...] = (gate * v).astype(o_ref.dtype)


# ---------------------------------------------------------------------------
# Weight prepack (call ONCE at init; reused by every forward call)
# ---------------------------------------------------------------------------
def prepack_glu_params(w1, b1, w2, b2, *, tn=512, compute_dtype=None):
    """Interleave fc1/fc2 weights per hidden tile into a single (K, 2*h_pad)
    slab (tile j holds [w1_tile_j | w2_tile_j] contiguously) so the kernel
    issues one (tm,K)@(K,2*tn) matmul per step.  Hidden dim is padded to a
    multiple of 128 so the in-kernel column split is lane-aligned."""
    K, H = w1.shape
    assert w2.shape == (K, H) and b1.shape == (H,) and b2.shape == (H,)
    if compute_dtype is not None:
        w1 = w1.astype(compute_dtype)
        w2 = w2.astype(compute_dtype)

    tn_eff = _round_up(H, 128) if H <= tn else tn
    assert tn_eff % 128 == 0
    h_pad = _round_up(H, tn_eff)
    n_j = h_pad // tn_eff
    if h_pad != H:
        w1 = jnp.pad(w1, ((0, 0), (0, h_pad - H)))
        w2 = jnp.pad(w2, ((0, 0), (0, h_pad - H)))
        b1 = jnp.pad(b1, (0, h_pad - H))
        b2 = jnp.pad(b2, (0, h_pad - H))

    wf = jnp.stack([w1.reshape(K, n_j, tn_eff),
                    w2.reshape(K, n_j, tn_eff)], axis=2).reshape(K, 2 * h_pad)
    bf = jnp.stack([b1.astype(jnp.float32).reshape(n_j, tn_eff),
                    b2.astype(jnp.float32).reshape(n_j, tn_eff)],
                   axis=1).reshape(1, 2 * h_pad)
    return {"wf": wf, "bf": bf, "input_size": K, "hidden_size": H, "tn": tn_eff}


# ---------------------------------------------------------------------------
# Forward
# ---------------------------------------------------------------------------
def gated_linear_unit(x, params, *, tm=512, tk=None, approx_sigmoid=False):
    """out = sigmoid(x @ w1 + b1) * (x @ w2 + b2), x: (..., input_size)."""
    wf, bf = params["wf"], params["bf"]
    K, H, tn_eff = params["input_size"], params["hidden_size"], params["tn"]
    h_pad = wf.shape[1] // 2
    n_j = h_pad // tn_eff

    lead = x.shape[:-1]
    out_dtype = x.dtype
    x2 = x.reshape(-1, K)
    if x2.dtype != wf.dtype:
        x2 = x2.astype(wf.dtype)          # e.g. bf16 compute path
    N = x2.shape[0]
    in_isz = jnp.dtype(wf.dtype).itemsize
    out_isz = jnp.dtype(out_dtype).itemsize

    # ---- row (M) tiling -----------------------------------------------------
    sub = 16 if in_isz == 2 else 8        # bf16 packs 2 rows per sublane
    if N <= tm:
        # Small-N fast path: still aim for >=2 row tiles (both v7x TCs busy).
        tm_eff = max(sub, _round_up((N + 1) // 2, sub))
    else:
        tm_eff = _round_up(tm, sub)
    n_pad = _round_up(N, tm_eff)
    if n_pad != N:
        x2 = jnp.pad(x2, ((0, n_pad - N), (0, 0)))
    n_i = n_pad // tm_eff

    # ---- K tiling (only when full-K blocks blow the VMEM budget) -------------
    budget = _vmem_budget_bytes()
    if tk is None:
        if _step_vmem_bytes(tm_eff, tn_eff, K, in_isz, out_isz) <= budget:
            tk_eff = K                    # keep full-K blocks; weights resident
        else:
            tk_eff = 128
            for cand in (2048, 1024, 512, 256, 128):
                if cand < K and _step_vmem_bytes(tm_eff, tn_eff, cand,
                                                 in_isz, out_isz) <= budget:
                    tk_eff = cand
                    break
    else:
        tk_eff = min(tk, K)

    if tk_eff < K and K % tk_eff != 0:
        # Prefer a 128-aligned tile that divides K to avoid padding weights.
        for cand in range(tk_eff, 127, -128):
            if K % cand == 0:
                tk_eff = cand
                break
    k_pad = _round_up(K, tk_eff)
    if k_pad != K:
        # TODO(synk): K not divisible by any 128-aligned tile incurs a per-call
        # weight-row pad; move this padding into prepack_glu_params at init.
        x2 = jnp.pad(x2, ((0, 0), (0, k_pad - K)))
        wf = jnp.pad(wf, ((0, k_pad - K), (0, 0)))
    n_k = k_pad // tk_eff

    # ---- grid: j outermost so the weight block stays resident across rows ---
    grid = (n_j, n_i, n_k)

    vmem_limit = int(min(
        budget,
        max(_step_vmem_bytes(tm_eff, tn_eff, tk_eff, in_isz, out_isz) + (4 << 20),
            32 << 20)))

    cost = pl.CostEstimate(
        flops=4 * N * K * H,
        transcendentals=N * H,
        bytes_accessed=(N * K + 2 * K * H) * in_isz + N * H * out_isz + 2 * H * 4,
    )

    kernel = functools.partial(_glu_kernel, tn=tn_eff, approx=approx_sigmoid)

    out = pl.pallas_call(
        kernel,
        out_shape=jax.ShapeDtypeStruct((n_pad, h_pad), out_dtype),
        grid_spec=pltpu.PrefetchScalarGridSpec(
            num_scalar_prefetch=0,
            grid=grid,
            in_specs=[
                pl.BlockSpec((tm_eff, tk_eff), lambda j, i, k: (i, k)),
                pl.BlockSpec((tk_eff, 2 * tn_eff), lambda j, i, k: (k, j)),
                pl.BlockSpec((1, 2 * tn_eff), lambda j, i, k: (0, j)),
            ],
            out_specs=pl.BlockSpec((tm_eff, tn_eff), lambda j, i, k: (i, j)),
            scratch_shapes=[pltpu.VMEM((tm_eff, 2 * tn_eff), jnp.float32)],
        ),
        compiler_params=pltpu.CompilerParams(
            dimension_semantics=("parallel", "parallel", "arbitrary"),
            vmem_limit_bytes=vmem_limit,
        ),
        cost_estimate=cost,
    )(x2, wf, bf)

    if n_pad != N or h_pad != H:
        out = out[:N, :H]
    return out.reshape(*lead, H)


# ---------------------------------------------------------------------------
# Init (nn.Linear-style uniform +-1/sqrt(fan_in); weights are (K, H))
# ---------------------------------------------------------------------------
def init_params(key, input_size, hidden_size, dtype=jnp.float32):
    k1, k2, k3, k4 = jax.random.split(key, 4)
    bound = 1.0 / (input_size ** 0.5)
    w1 = jax.random.uniform(k1, (input_size, hidden_size), dtype, -bound, bound)
    b1 = jax.random.uniform(k2, (hidden_size,), dtype, -bound, bound)
    w2 = jax.random.uniform(k3, (input_size, hidden_size), dtype, -bound, bound)
    b2 = jax.random.uniform(k4, (hidden_size,), dtype, -bound, bound)
    return w1, b1, w2, b2


if __name__ == "__main__":
    key = jax.random.PRNGKey(0)
    hp = jax.lax.Precision.HIGHEST

    def ref_glu(x, w1, b1, w2, b2):
        g = jnp.dot(x, w1, precision=hp) + b1
        v = jnp.dot(x, w2, precision=hp) + b2
        return jax.nn.sigmoid(g) * v

    # -- test 1: module-sized shapes (batch=2, seq=8, input=32, hidden=32) ----
    batch, seq, input_size, hidden_size = 2, 8, 32, 32
    kx, kp = jax.random.split(key)
    x = jax.random.normal(kx, (batch, seq, input_size), dtype=jnp.float32)
    w1, b1, w2, b2 = init_params(kp, input_size, hidden_size)
    params = prepack_glu_params(w1, b1, w2, b2)      # pack once, reuse
    out = gated_linear_unit(x, params)
    jax.block_until_ready(out)
    ref = ref_glu(x, w1, b1, w2, b2)
    assert out.shape == ref.shape
    assert jnp.allclose(out, ref, atol=1e-5, rtol=1e-4), "test1 mismatch"

    # -- test 2: multiple row/hidden tiles, odd sizes --------------------------
    N2, K2, H2 = 300, 160, 640
    k1, k2 = jax.random.split(kp)
    x2 = jax.random.normal(k1, (N2, K2), dtype=jnp.float32)
    p2w = init_params(k2, K2, H2)
    params2 = prepack_glu_params(*p2w, tn=512)
    out2 = gated_linear_unit(x2, params2)
    jax.block_until_ready(out2)
    ref2 = ref_glu(x2, *p2w)
    assert jnp.allclose(out2, ref2, atol=1e-3, rtol=1e-3), "test2 mismatch"

    # -- test 3: forced K tiling (accumulator path) + approx EUP sigmoid -------
    N3, K3, H3 = 64, 256, 256
    k3, k4 = jax.random.split(k2)
    x3 = jax.random.normal(k3, (N3, K3), dtype=jnp.float32)
    p3w = init_params(k4, K3, H3)
    params3 = prepack_glu_params(*p3w)
    out3 = gated_linear_unit(x3, params3, tk=128, approx_sigmoid=True)
    jax.block_until_ready(out3)
    ref3 = ref_glu(x3, *p3w)
    assert jnp.allclose(out3, ref3, atol=1e-2, rtol=1e-2), "test3 mismatch"

    print("KERNEL_OK")
</pallas_src>

<mosaic_0001>
module attributes {stable_mosaic.version = 11 : i64} {
  func.func @_glu_kernel(%arg0: i32, %arg1: i32, %arg2: i32, %arg3: memref<8x32xf32, #tpu.memory_space<vmem>>, %arg4: memref<32x256xf32, #tpu.memory_space<vmem>>, %arg5: memref<1x256xf32, #tpu.memory_space<vmem>>, %arg6: memref<8x128xf32, #tpu.memory_space<vmem>>, %arg7: memref<8x256xf32, #tpu.memory_space<vmem>>) attributes {dimension_semantics = [#tpu.dimension_semantics<parallel>, #tpu.dimension_semantics<parallel>, #tpu.dimension_semantics<arbitrary>], iteration_bounds = array<i64: 1, 2, 1>, scalar_prefetch = 0 : i64, scratch_operands = 1 : i64, tpu.core_type = #tpu.core_type<tc>, window_params = [{transform_indices = @transform_0, window_bounds = array<i64: 8, 32>}, {transform_indices = @transform_1, window_bounds = array<i64: 32, 256>}, {transform_indices = @transform_2, window_bounds = array<i64: 1, 256>}, {transform_indices = @transform_3, window_bounds = array<i64: 8, 128>}]} {
    %c0_i32 = arith.constant 0 : i32
    %0 = arith.cmpi eq, %arg2, %c0_i32 : i32
    %1 = arith.extui %0 : i1 to i32
    %c0_i32_0 = arith.constant 0 : i32
    %2 = arith.cmpi ne, %1, %c0_i32_0 : i32
    scf.if %2 {
      %cst_10 = arith.constant 0.000000e+00 : f32
      %12 = vector.broadcast %cst_10 : f32 to vector<8x256xf32>
      %c0_11 = arith.constant 0 : index
      %c0_12 = arith.constant 0 : index
      %13 = vector.load %arg7[%c0_11, %c0_12] : memref<8x256xf32, #tpu.memory_space<vmem>>, vector<8x256xf32>
      tpu.vector_store %arg7[%c0_11, %c0_12], %12 {strides = array<i32>} : memref<8x256xf32, #tpu.memory_space<vmem>>, vector<8x256xf32>,
    } else {
    }
    %c0 = arith.constant 0 : index
    %c0_1 = arith.constant 0 : index
    %3 = vector.load %arg7[%c0, %c0_1] : memref<8x256xf32, #tpu.memory_space<vmem>>, vector<8x256xf32>
    %c0_2 = arith.constant 0 : index
    %c0_3 = arith.constant 0 : index
    %4 = vector.load %arg3[%c0_2, %c0_3] : memref<8x32xf32, #tpu.memory_space<vmem>>, vector<8x32xf32>
    %c0_4 = arith.constant 0 : index
    %c0_5 = arith.constant 0 : index
    %5 = vector.load %arg4[%c0_4, %c0_5] : memref<32x256xf32, #tpu.memory_space<vmem>>, vector<32x256xf32>
    %cst = arith.constant dense<0.000000e+00> : vector<8x256xf32>
    %6 = tpu.matmul %4, %5, %cst {dimension_numbers = #tpu.dot_dimension_numbers<[1], [0], [0], [1], [0, 0, 1, 1], [], []>} : vector<8x32xf32>, vector<32x256xf32>, vector<8x256xf32> -> vector<8x256xf32>
    %7 = arith.addf %3, %6 : vector<8x256xf32>
    %c0_6 = arith.constant 0 : index
    %c0_7 = arith.constant 0 : index
    %8 = vector.load %arg7[%c0_6, %c0_7] : memref<8x256xf32, #tpu.memory_space<vmem>>, vector<8x256xf32>
    tpu.vector_store %arg7[%c0_6, %c0_7], %7 {strides = array<i32>} : memref<8x256xf32, #tpu.memory_space<vmem>>, vector<8x256xf32>,
    %c0_i32_8 = arith.constant 0 : i32
    %9 = arith.cmpi eq, %arg2, %c0_i32_8 : i32
    %10 = arith.extui %9 : i1 to i32
    %c0_i32_9 = arith.constant 0 : i32
    %11 = arith.cmpi ne, %10, %c0_i32_9 : i32
    scf.if %11 {
      %c0_10 = arith.constant 0 : index
      %c0_11 = arith.constant 0 : index
      %12 = vector.load %arg7[%c0_10, %c0_11] : memref<8x256xf32, #tpu.memory_space<vmem>>, vector<8x256xf32>
      %c0_12 = arith.constant 0 : index
      %c0_13 = arith.constant 0 : index
      %13 = vector.load %arg5[%c0_12, %c0_13] : memref<1x256xf32, #tpu.memory_space<vmem>>, vector<1x256xf32>
      %14 = vector.broadcast %13 : vector<1x256xf32> to vector<8x256xf32>
      %15 = arith.addf %12, %14 : vector<8x256xf32>
      %16 = vector.extract_strided_slice %15 {offsets = [0, 0], sizes = [8, 128], strides = [1, 1]} : vector<8x256xf32> to vector<8x128xf32>
      %17 = vector.extract_strided_slice %15 {offsets = [0, 128], sizes = [8, 128], strides = [1, 1]} : vector<8x256xf32> to vector<8x128xf32>
      %cst_14 = arith.constant 0.000000e+00 : f32
      %18 = vector.broadcast %cst_14 : f32 to vector<8x128xf32>
      %19 = arith.subf %18, %16 : vector<8x128xf32>
      %20 = math.exp %19 : vector<8x128xf32>
      %cst_15 = arith.constant 1.000000e+00 : f32
      %21 = vector.broadcast %cst_15 : f32 to vector<8x128xf32>
      %22 = arith.addf %21, %20 : vector<8x128xf32>
      %23 = tpu.reciprocal %22 : vector<8x128xf32> -> vector<8x128xf32>
      %24 = arith.mulf %23, %17 : vector<8x128xf32>
      %c0_16 = arith.constant 0 : index
      %c0_17 = arith.constant 0 : index
      %25 = vector.load %arg6[%c0_16, %c0_17] : memref<8x128xf32, #tpu.memory_space<vmem>>, vector<8x128xf32>
      tpu.vector_store %arg6[%c0_16, %c0_17], %24 {strides = array<i32>} : memref<8x128xf32, #tpu.memory_space<vmem>>, vector<8x128xf32>,
    } else {
    }
    return
  }
  func.func @transform_0(%arg0: i32, %arg1: i32, %arg2: i32) -> (i32, i32) {
    %c0_i32 = arith.constant 0 : i32
    return %arg1, %arg2 : i32, i32
  }
  func.func @transform_1(%arg0: i32, %arg1: i32, %arg2: i32) -> (i32, i32) {
    %c0_i32 = arith.constant 0 : i32
    return %arg2, %arg0 : i32, i32
  }
  func.func @transform_2(%arg0: i32, %arg1: i32, %arg2: i32) -> (i32, i32) {
    %c0_i32 = arith.constant 0 : i32
    %c0_i32_0 = arith.constant 0 : i32
    return %c0_i32, %arg0 : i32, i32
  }
  func.func @transform_3(%arg0: i32, %arg1: i32, %arg2: i32) -> (i32, i32) {
    %c0_i32 = arith.constant 0 : i32
    return %arg1, %arg0 : i32, i32
  }
}

</mosaic_0001>

<bundles_post_ra>
// kernel: tpu_custom_call.1
= control target key start
LH: loop header
LB: loop body
LE: loop exit
PB: predicated region body
PF: predicated region fallthrough
CT: control target
= control target key end

     0   :  { %8 = vsyncpa [#allocation4], 0  ;;  %s1004_s0 = inlined_call_operand.hbm [shape: f32[16,32], index: 0, kind: input, shape index: {}]   ;;  %s1005_s1 = inlined_call_operand.hbm [shape: f32[32,256], index: 1, kind: input, shape index: {}]   ;;  %s1006_s2 = inlined_call_operand.vmem [shape: f32[1,256], index: 2, kind: input, shape index: {}]   ;;  %s1007_s3 = inlined_call_operand.hbm [shape: f32[16,128], index: 3, kind: output, shape index: {}]  }
   0x1   :  { %10 = vsyncpa [#allocation4 + $0x1], 0 }
   0x2   :  { %11 = vsyncpa [#allocation7], 0 }
   0x3   :  { %12 = vsyncpa [#allocation5], 0 }
   0x4   :  { %14 = vsyncpa [#allocation5 + $0x1], 0  ;;  %s783_s12 = smov 0   ;;  %s785_s13 = smov 0  }
   0x5   :  { %s787_s14 = smov 0   ;;  %s789_s15 = smov 0  }
   0x6   :  { %s791_s16 = smov 0   ;;  %s793_s17 = smov 0  }
   0x7 LB: > { %s506_s18 = sadd.s32 4294967295, %s755_s17   ;;  %s507_s19 = sadd.s32 4294967294, %s755_s17   ;;  %s755_s17 = sphi %s793_s17, %s20_s17   ;;  %s751_s16 = sphi %s791_s16, %s1031_s16   ;;  %s747_s15 = sphi %s789_s15, %s1030_s15   ;;  %s743_s14 = sphi %s787_s14, %s1029_s14   ;;  %s739_s13 = sphi %s785_s13, %s1028_s13   ;;  %s735_s12 = sphi %s783_s12, %s1027_s12  }
   0x8   : > { %p61_p0 = scmp.ne.s32.totalorder %s739_s13, %s735_s12  ;;  %p817_p1 = scmp.eq.s32.totalorder %s506_s18, 0 }
   0x9   : > { %p821_p2 = scmp.eq.s32.totalorder %s506_s18, 1  ;;  %p147_p3 = scmp.eq.s32.totalorder %s507_s19, 1 }
   0xa   : > { %s1012_s20 = scalar_select %p817_p1, 1, 0 }
   0xb   : > { %s1013_s21 = scalar_select %p821_p2, 1, 0 }
   0xc   : > { %p827_p4 = por %p817_p1, %p61_p0  ;;  %p508_p5 = scmp.ge.s32.totalorder %s755_s17, 1 }
   0xd   : > { %p832_p6 = por %p147_p3, %p61_p0  ;;  %p154_p7 = scmp.lt.s32.totalorder %s755_s17, 3 }
   0xe   : > { %s1014_s22 = scalar_select %p827_p4, 1, 0 }
   0xf   : > { %s1015_s23 = scalar_select %p832_p6, 1, 0 }
  0x10   : > { %p837_p8 = pnand %p508_p5, %p154_p7  ;;  %s757_s25 = smov [#allocation6]  }
  0x11   : > { %s172_s26 = sshll.u32 %s757_s25, 4  ;;  %s35_s28 = sadd.s32 1, %s751_s16  ;;  %s173_s26 = int_to_ptr.vmem [resolvable:$true] %s172_s26 }
  0x12   : > { %s1016_s24 = scalar_select %p837_p8, 1, 0 }
  0x13   : > { %p539_p9 = pneg %p837_p8  ;;  %s611_s4 = scalar_lea.hbm %s1005_s1, 1024 }
  0x14   : > { %p612_p12 = scmp.ne.s32.totalorder %s1005_s1, %s611_s4  ;;  %p618_p5 = scmp.lt.u32.totalorder %s611_s4, %s1005_s1 }
  0x15   : > { %p846_p11 = pnand %p539_p9, %p817_p1 }
  0x17   : > { %p613_p13 = pneg %p846_p11 }
  0x19   : > { %p614_p0 = pnand %p613_p13, %p612_p12 }
  0x1b   : > { %p615_p3 = pneg %p614_p0 }
  0x1d   : > { %p620_p7 = pnand %p618_p5, %p615_p3 }
  0x1f   : > { %623 = shalt.err (!%p620_p7)
}
  0x20   : > { %s624_s9 = scalar_lea.vmem %s173_s26, 1024  ;;  %p632_p1 = scmp.lt.s32.totalorder %s173_s26, %s173_s26 }
  0x21   : > { %p625_p9 = scmp.ne.s32.totalorder %s173_s26, %s624_s9  ;;  %p633_p4 = scmp.lt.s32.totalorder %s624_s9, %s624_s9 }
  0x23   : > { %p627_p10 = pnand %p625_p9, %p613_p13  ;;  %p634_p8 = por %p633_p4, %p632_p1 }
  0x25   : > { %p628_p6 = pneg %p627_p10 }
  0x27   : > { %p635_p2 = pnand %p634_p8, %p628_p6 }
  0x29   : > { %638 = shalt.err (!%p635_p2)
}
  0x2a   : > { %s758_s10 = smov 256   ;;  %s759_s11 = smov 16  }
  0x2b   : > { %542 = dma.hbm_to_vmem [thread:$0]  (!%p846_p11), %s1005_s1, 1024, %s173_s26, [#allocation7], %s758_s10, %s758_s10, %s759_s11  }
  0x2c   : > { %p37_p1 = scmp.ge.s32.totalorder %s35_s28, 2  ;;  %s48_s25 = sadd.s32 1, %s743_s14 }
  0x2d   : > { %p55_p2 = scmp.ne.s32.totalorder %s743_s14, %s739_s13  ;;  %p56_p4 = scmp.eq.s32.totalorder %s755_s17, 0 }
  0x2e   : > { %s1033_s28 = smov (%p37_p1, %s35_s28), 0  ;;  %p1019_p8 = scmp.ne.s32.totalorder %s1013_s21, 0 }
  0x2f   : > { %p873_p6 = por %p56_p4, %p55_p2  ;;  %s43_s27 = ssub.s32 %s751_s16, %s1033_s28 }
  0x30   : > { %p879_p10 = por %p1019_p8, %p55_p2  ;;  %p552_p12 = scmp.lt.s32.totalorder %s755_s17, 2 }
  0x31   : > { %p46_p11 = scmp.eq.s32.totalorder %s43_s27, 0  ;;  %s194_s26 = sand.u32 1, %s743_s14  }
  0x32   : > { %s512_s4 = sshll.u32 %s194_s26, 3  ;;  %s513_s6 = sshll.u32 %s751_s16, 7 }
  0x33   : > { %s888_s5 = scalar_select %p46_p11, %s743_s14, %s48_s25  }
  0x34   : > { %s894_s9 = scalar_lea.hbm %s1004_s0, %s513_s6  ;;  %s198_s21 = scalar_lea.vmem [#allocation3], %s512_s4 }
  0x35   : > { %s206_s10 = sshll.u32 %s198_s21, 4  ;;  %p900_p13 = pnand %p552_p12, %p873_p6  ;;  %s896_s10 = int_to_ptr.vmem [resolvable:$true] %s206_s10 }
  0x36   : > { %s195_s18 = scalar_lea.sflag [#allocation4], %s194_s26  ;;  %s639_s19 = scalar_lea.hbm %s894_s9, 128 }
  0x37   : > { %p640_p0 = scmp.ne.s32.totalorder %s894_s9, %s639_s19  ;;  %p641_p3 = pneg %p900_p13 }
  0x38   : > { %s644_s4 = scalar_lea.hbm %s1004_s0, 256  ;;  %p645_p9 = scmp.lt.u32.totalorder %s894_s9, %s1004_s0 }
  0x39   : > { %p642_p5 = pnand %p641_p3, %p640_p0  ;;  %p646_p1 = scmp.lt.u32.totalorder %s644_s4, %s639_s19 }
  0x3a   : > { %p648_p4 = scmp.lt.u32.totalorder %s639_s19, %s894_s9 }
  0x3b   : > { %p643_p7 = pneg %p642_p5  ;;  %p647_p2 = por %p646_p1, %p645_p9 }
  0x3d   : > { %p649_p6 = por %p648_p4, %p647_p2 }
  0x3f   : > { %p650_p8 = pnand %p649_p6, %p643_p7 }
  0x41   : > { %653 = shalt.err (!%p650_p8)
}
  0x42   : > { %s654_s26 = scalar_lea.vmem %s896_s10, 128  ;;  %s760_s7 = smov [#allocation3]  }
  0x43   : > { %p655_p12 = scmp.ne.s32.totalorder %s896_s10, %s654_s26  ;;  %s659_s8 = sshll.u32 %s760_s7, 4  ;;  %s660_s8 = int_to_ptr.vmem [resolvable:$false] %s659_s8 }
  0x44   : > { %s661_s21 = scalar_lea.vmem %s660_s8, 256  ;;  %p662_p5 = scmp.lt.s32.totalorder %s896_s10, %s660_s8 }
  0x45   : > { %p657_p11 = pnand %p655_p12, %p641_p3  ;;  %p663_p9 = scmp.lt.s32.totalorder %s661_s21, %s654_s26 }
  0x47   : > { %p658_p0 = pneg %p657_p11  ;;  %p664_p1 = por %p663_p9, %p662_p5 }
  0x49   : > { %p665_p2 = pnand %p664_p1, %p658_p0 }
  0x4b   : > { %668 = shalt.err (!%p665_p2)
}
  0x4c   : > { %546 = dma.hbm_to_vmem [thread:$0]  (!%p900_p13), %s894_s9, 128, %s896_s10, %s195_s18  }
  0x4d   : > { %p1022_p7 = scmp.ne.s32.totalorder %s1016_s24, 0 }
  0x4e   : > { %s932_s19 = sand.u32 (!%p1022_p7), 1, %s739_s13   ;;  %p1023_p3 = scmp.ne.s32.totalorder (!%p1022_p7), %s1014_s22, 0 }
  0x4f   : > { %215 = sbr.rel (%p1022_p7) target bundleno = 359 (0x167), region = 32  ;;  %s515_s25 = sshll.u32 (!%p1022_p7), %s932_s19, 3 }
  0x50   : > { %s218_s27 = scalar_lea.sflag (!%p1022_p7), [#allocation4], %s932_s19  ;;  %s221_s4 = scalar_lea.vmem (!%p1022_p7), [#allocation3], %s515_s25 }
  0x56   : > { %722 = dma.done.wait (%p1023_p3), %s218_s27, 128  }
  0x57   : > { %724 = vsyncadd (%p1023_p3), %s218_s27, 4294967168  ;;  %p1024_p13 = scmp.ne.s32.totalorder %s1012_s20, 0 }
  0x59   : > { %726 = dma.done.wait (%p1024_p13), [#allocation7], 1024  }
  0x5a   : > { %728 = vsyncadd (%p1024_p13), [#allocation7], 4294966272  ;;  %v761_v0 = vmov 0.0   ;;  %v269_v1 = vld [vmem:[#allocation6 + $0x8] sm:$0xff]  ;;  %v271_v2 = vld [vmem:[#allocation6 + $0x18] sm:$0xff]  ;;  %vm276_vm0 = vcmask 261120   ;;  %v362_v14 = vlaneseq }
  0x5b   : > { %344 = vmatprep.mubr.f32.mxu0 %v761_v0  ;;  %v268_v3 = vld [vmem:[#allocation6] sm:$0xff]  ;;  %v523_v4 = vpack.c.bf16 %v271_v2, %v269_v1  ;;  %v270_v5 = vld [vmem:[#allocation6 + $0x10] sm:$0xff]  ;;  %v273_v6 = vld [vmem:[#allocation6 + $0x28] sm:$0xff]  ;;  %s520_s24 = sshll.u32 %s747_s15, 7  ;;  %s251_s9 = scalar_lea.vmem [#allocation8], %s515_s25 }
  0x5c   : > { %v275_v7 = vld [vmem:[#allocation6 + $0x38] sm:$0xff]  ;;  %v525_v8 = vpack.c.bf16 %v270_v5, %v268_v3  ;;  %v272_v10 = vld [vmem:[#allocation6 + $0x20] sm:$0xff]  ;;  %v274_v11 = vld [vmem:[#allocation6 + $0x30] sm:$0xff]  ;;  %v363_v15 = vshrl.u32 %v362_v14, 7  ;;  %s396_s10 = sshll.u32 %s251_s9, 4  ;;  %s955_s29 = scalar_lea.hbm %s1007_s3, %s520_s24  ;;  %s957_s10 = int_to_ptr.vmem [resolvable:$true] %s396_s10 }
  0x5d   : > { %v527_v9 = vpack.c.bf16 %v275_v7, %v273_v6  ;;  %524 = vmatprep.subr.bf16.mxu0 %v523_v4  ;;  %v529_v12 = vpack.c.bf16 %v274_v11, %v272_v10  ;;  %v267_v13 = vld [vmem:[%s221_s4] sm:$0xff]  ;;  %s382_s6 = scalar_lea.sflag [#allocation5], %s932_s19  ;;  %s669_s26 = scalar_lea.vmem %s957_s10, 128 }
  0x5e   : > { %526 = vmatpush1.bf16.msra.mxu0 %v525_v8  ;;  %v364_v16 = vsub.s32 0, %v363_v15  ;;  %v360_v17 = vld [vmem:[%s1006_s2] sm:$0x3]  ;;  %v368_v26 = vsub.s32 1, %v363_v15  ;;  %p670_p4 = scmp.ne.s32.totalorder %s957_s10, %s669_s26  ;;  %s762_s15 = smov [#allocation8]  }
  0x5f   : > { %528 = vmatprep.subr.bf16.mxu0 %v527_v9  ;;  %s673_s7 = sshll.u32 %s762_s15, 4  ;;  %s674_s7 = int_to_ptr.vmem [resolvable:$false] %s673_s7 }
  0x60   : > { %v365_v18 = vrot.slane %v360_v17, %v364_v16  ;;  %v369_v27 = vrot.slane %v360_v17, %v368_v26  ;;  %p671_p6 = pnand %p670_p4, %p879_p10  ;;  %s675_s8 = scalar_lea.vmem %s674_s7, 256 }
  0x61   : > { %p676_p12 = scmp.lt.s32.totalorder %s957_s10, %s674_s7  ;;  %p677_p11 = scmp.lt.s32.totalorder %s675_s8, %s669_s26 }
  0x62   : > { %530 = vmatpush1.bf16.msra.mxu0 %v529_v12  ;;  %p672_p8 = pneg %p671_p6 }
  0x63   : > { %p678_p0 = por %p677_p11, %p676_p12 }
  0x65   : > { %518 = vmatmul.mubr.msk.f32.vlgmr.msra.gmra.mrb[0].mxu0 %vm276_vm0, %v267_v13  ;;  %p679_p5 = pnand %p678_p0, %p672_p8 }
 0x138   : > { %v346_v19 = vpop.f32.mrb[0].mxu0 }
 0x139   : > { %v372_v20 = vadd.f32 %v365_v18, %v346_v19  ;;  %v348_v21 = vpop.f32.mrb[1].mxu0 }
 0x13a   : > { %v373_v28 = vadd.f32 %v369_v27, %v348_v21 }
 0x13b   : > { %v374_v22 = vsub.f32 0.0, %v372_v20 }
 0x13d   : > { %v375_v23 = vmul.f32 1.442695, %v374_v22 }
 0x13f   : > { %607 = vpow2.f32 %v375_v23 }
 0x149   : > { %v608_v24 = vpop.eup %607 }
 0x14a   : > { %v377_v25 = vadd.f32 1.0, %v608_v24 }
 0x14c   : > { %609 = vrcp.f32 %v377_v25 }
 0x156   : > { %v610_v29 = vpop.eup %609 }
 0x157   : > { %v379_v30 = vmul.f32 %v610_v29, %v373_v28 }
 0x159   : > { %380 = vst [vmem:[%s251_s9] sm:$0xff] %v379_v30 }
 0x15a   : > { %682 = shalt.err (!%p679_p5)
}
 0x15b   : > { %s683_s21 = scalar_lea.hbm %s955_s29, 128  ;;  %s687_s27 = scalar_lea.hbm %s1007_s3, 256 }
 0x15c   : > { %p684_p9 = scmp.ne.s32.totalorder %s955_s29, %s683_s21  ;;  %p688_p7 = scmp.lt.u32.totalorder %s955_s29, %s1007_s3 }
 0x15d   : > { %p689_p3 = scmp.lt.u32.totalorder %s687_s27, %s683_s21  ;;  %p691_p4 = scmp.lt.u32.totalorder %s683_s21, %s955_s29 }
 0x15e   : > { %p685_p1 = pnand %p684_p9, %p879_p10 }
 0x15f   : > { %p690_p13 = por %p689_p3, %p688_p7 }
 0x160   : > { %p686_p2 = pneg %p685_p1 }
 0x161   : > { %p692_p6 = por %p691_p4, %p690_p13 }
 0x163   : > { %p693_p8 = pnand %p692_p6, %p686_p2 }
 0x165   : > { %696 = shalt.err (!%p693_p8)
}
 0x166   : > { %537 = dma.vmem_to_hbm [thread:$0]  (%p879_p10), %s957_s10, 128, %s955_s29, %s382_s6  }
 0x167 PF: > { %s408_s22 = sand.u32 1, %s735_s12   ;;  %p1025_p12 = scmp.ne.s32.totalorder %s1015_s23, 0 }
 0x168   : > { %p1026_p11 = scmp.ge.s32.totalorder %s755_s17, 2  ;;  %s409_s24 = scalar_lea.sflag [#allocation5], %s408_s22 }
 0x16a   : > { %p548_p0 = pnand %p1026_p11, %p1025_p12 }
 0x16c   : > { %730 = dma.done.wait (!%p548_p0), %s409_s24, 128  }
 0x16d   : > { %732 = vsyncadd (!%p548_p0), %s409_s24, 4294967168  ;;  %s20_s17 = sadd.s32 1, %s755_s17   ;;  %s1027_s12 = smov %s739_s13 }
 0x16e   : > { %p17_p5 = scmp.ge.s32.totalorder %s20_s17, 4   ;;  %s1028_s13 = smov %s743_s14 }
 0x16f   : > { %s1029_s14 = smov %s888_s5  ;;  %s1030_s15 = smov %s751_s16 }
 0x170   : > { %s1031_s16 = smov %s1033_s28  ;;  %19 = sbr.rel (!%p17_p5) target bundleno = 7 (0x7), region = 93 }
 0x177   :  { %414 = vsyncpa [#allocation4], 1 }
 0x178   :  { %416 = vsyncpa [#allocation4 + $0x1], 1 }
 0x179   :  { %417 = vsyncpa [#allocation7], 1 }
 0x17a   :  { %418 = vsyncpa [#allocation5], 1 }
 0x17b   :  { %420 = vsyncpa [#allocation5 + $0x1], 1 }

</bundles_post_ra>
